<compile_context>
chip_gen: v6e
topology: v6e:2x2x1
jax: 0.10.0
libtpu: 0.0.40
codegen_flags: <defaults>
</compile_context>

<pallas_src>
import functools
import math

import jax
import jax.numpy as jnp
import numpy as np
from jax.experimental import pallas as pl
from jax.experimental.pallas import tpu as pltpu


# ----------------------------------------------------------------------------
# Fused kernel: QKV projection + masked multi-head attention + output proj.
# ----------------------------------------------------------------------------
def _csa_kernel(x_ref, wqkv_ref, bqkv_ref, wproj_ref, bproj_ref, o_ref,
                *, n_head, joined_dim, scale):
    T, C = x_ref.shape          # batch dim is squeezed away by the BlockSpec
    hd = C // n_head

    x = x_ref[...].astype(jnp.bfloat16)

    # Fused QKV projection: (T, 3C); bf16 operands, f32 accumulation.
    qkv = jnp.dot(x, wqkv_ref[...], preferred_element_type=jnp.float32)
    qkv = qkv + bqkv_ref[...]
    q2 = qkv[:, 0 * C:1 * C]
    k2 = qkv[:, 1 * C:2 * C]
    v2 = qkv[:, 2 * C:3 * C]

    # In-kernel mask: causal AND (col % joined_dim != joined_dim - 1).
    row = jax.lax.broadcasted_iota(jnp.int32, (T, T), 0)
    col = jax.lax.broadcasted_iota(jnp.int32, (T, T), 1)
    allow = (row >= col) & ((col % joined_dim) != (joined_dim - 1))

    # Per-head attention (statically unrolled over heads), packed lane-dense.
    y_heads = []
    for h in range(n_head):
        sl = slice(h * hd, (h + 1) * hd)
        qh = q2[:, sl].astype(jnp.bfloat16)
        kh = k2[:, sl].astype(jnp.bfloat16)
        vh = v2[:, sl].astype(jnp.bfloat16)
        # q @ k^T without materializing a transpose: contract last dims.
        s = jax.lax.dot_general(
            qh, kh, (((1,), (1,)), ((), ())),
            preferred_element_type=jnp.float32) * scale
        s = jnp.where(allow, s, -1e30)          # finite fill (no -inf NaNs)
        m = jnp.max(s, axis=-1, keepdims=True)
        e = jnp.exp(s - m)
        denom = jnp.sum(e, axis=-1, keepdims=True)
        p = e * pl.reciprocal(denom, approx=True)   # EUP slot, ~free
        y_heads.append(
            jnp.dot(p.astype(jnp.bfloat16), vh,
                    preferred_element_type=jnp.float32))
    y = jnp.concatenate(y_heads, axis=-1)       # (T, C), lane-dense

    # Output projection.
    out = jnp.dot(y.astype(jnp.bfloat16), wproj_ref[...],
                  preferred_element_type=jnp.float32) + bproj_ref[...]
    o_ref[...] = out.astype(o_ref.dtype)


# ----------------------------------------------------------------------------
# Module wrapper
# ----------------------------------------------------------------------------
def causal_self_attention(x, params, n_head, joined_dim):
    """x: (B, T, C) f32. params are in PyTorch nn.Linear layout (out, in)."""
    B, T, C = x.shape
    hd = C // n_head

    # Pre-transpose + stack weights once (conceptually done at init):
    # (C, 3C) bf16 for the MXU; biases stay f32 for accurate accumulation.
    wqkv = jnp.concatenate(
        [params["query_w"].T, params["key_w"].T, params["value_w"].T],
        axis=1).astype(jnp.bfloat16)
    bqkv = jnp.concatenate(
        [params["query_b"], params["key_b"], params["value_b"]]
    ).reshape(1, 3 * C).astype(jnp.float32)
    wproj = params["proj_w"].T.astype(jnp.bfloat16)
    bproj = params["proj_b"].reshape(1, C).astype(jnp.float32)

    kernel = functools.partial(
        _csa_kernel, n_head=n_head, joined_dim=joined_dim,
        scale=1.0 / math.sqrt(hd))

    return pl.pallas_call(
        kernel,
        out_shape=jax.ShapeDtypeStruct((B, T, C), jnp.float32),
        grid=(B,),
        in_specs=[
            pl.BlockSpec((None, T, C), lambda b: (b, 0, 0)),   # x (batch squeezed)
            pl.BlockSpec((C, 3 * C), lambda b: (0, 0)),        # stacked W_qkv^T
            pl.BlockSpec((1, 3 * C), lambda b: (0, 0)),        # stacked b_qkv
            pl.BlockSpec((C, C), lambda b: (0, 0)),            # W_proj^T
            pl.BlockSpec((1, C), lambda b: (0, 0)),            # b_proj
        ],
        out_specs=pl.BlockSpec((None, T, C), lambda b: (b, 0, 0)),
        compiler_params=pltpu.CompilerParams(
            dimension_semantics=("parallel",)),
    )(x, wqkv, bqkv, wproj, bproj)


# ----------------------------------------------------------------------------
# Params init (mimics nn.Linear U(-1/sqrt(fan_in), 1/sqrt(fan_in)))
# ----------------------------------------------------------------------------
def init_params(key, n_embd):
    bound = 1.0 / math.sqrt(n_embd)
    keys = jax.random.split(key, 8)
    p = {}
    for i, name in enumerate(["key", "query", "value", "proj"]):
        p[f"{name}_w"] = jax.random.uniform(
            keys[2 * i], (n_embd, n_embd), jnp.float32, -bound, bound)
        p[f"{name}_b"] = jax.random.uniform(
            keys[2 * i + 1], (n_embd,), jnp.float32, -bound, bound)
    return p


# ----------------------------------------------------------------------------
# Pure-JAX f32 reference (sanity check)
# ----------------------------------------------------------------------------
def reference(x, params, n_head, joined_dim, block_size):
    B, T, C = x.shape
    hd = C // n_head
    mask = jnp.tril(jnp.ones((block_size, block_size), dtype=jnp.float32))
    mask = mask.at[:, joined_dim - 1::joined_dim].set(0.0)
    mask = mask[:T, :T]

    def lin(z, w, b):
        return z @ w.T + b

    def heads(z):
        return z.reshape(B, T, n_head, hd).transpose(0, 2, 1, 3)

    k = heads(lin(x, params["key_w"], params["key_b"]))
    q = heads(lin(x, params["query_w"], params["query_b"]))
    v = heads(lin(x, params["value_w"], params["value_b"]))
    att = (q @ jnp.swapaxes(k, -2, -1)) * (1.0 / math.sqrt(hd))
    att = jnp.where(mask == 0.0, -jnp.inf, att)
    att = jax.nn.softmax(att, axis=-1)
    y = att @ v
    y = y.transpose(0, 2, 1, 3).reshape(B, T, C)
    return lin(y, params["proj_w"], params["proj_b"])


# ----------------------------------------------------------------------------
if __name__ == "__main__":
    # Config consistent with the module:
    #   n_embd=32, n_head=4, block_size=8, observation_dim=2, action_dim=1
    #   -> joined_dim = 5
    B, T = 2, 8
    n_embd, n_head = 32, 4
    block_size = 8
    observation_dim, action_dim = 2, 1
    joined_dim = observation_dim + action_dim + 2

    key = jax.random.PRNGKey(0)
    k_param, k_x = jax.random.split(key)
    params = init_params(k_param, n_embd)
    x = jax.random.normal(k_x, (B, T, n_embd), dtype=jnp.float32)

    out = causal_self_attention(x, params, n_head, joined_dim)
    out = jax.block_until_ready(out)

    ref = jax.block_until_ready(
        reference(x, params, n_head, joined_dim, block_size))
    # Loose tolerance: kernel uses bf16 MXU operands with f32 accumulation.
    np.testing.assert_allclose(np.asarray(out), np.asarray(ref),
                               rtol=5e-2, atol=5e-2)

    print("KERNEL_OK")
</pallas_src>

<mosaic_0001>
module attributes {stable_mosaic.version = 11 : i64} {
  func.func @_csa_kernel(%arg0: i32, %arg1: memref<1x8x32xf32, #tpu.memory_space<vmem>>, %arg2: memref<32x96xbf16, #tpu.memory_space<vmem>>, %arg3: memref<1x96xf32, #tpu.memory_space<vmem>>, %arg4: memref<32x32xbf16, #tpu.memory_space<vmem>>, %arg5: memref<1x32xf32, #tpu.memory_space<vmem>>, %arg6: memref<1x8x32xf32, #tpu.memory_space<vmem>>) attributes {dimension_semantics = [#tpu.dimension_semantics<parallel>], iteration_bounds = array<i64: 2>, scalar_prefetch = 0 : i64, scratch_operands = 0 : i64, tpu.core_type = #tpu.core_type<tc>, window_params = [{transform_indices = @transform_0, window_bounds = array<i64: 1, 8, 32>}, {pipeline_mode = #tpu.pipeline_mode<synchronous>, transform_indices = @transform_1, window_bounds = array<i64: 32, 96>}, {pipeline_mode = #tpu.pipeline_mode<synchronous>, transform_indices = @transform_2, window_bounds = array<i64: 1, 96>}, {pipeline_mode = #tpu.pipeline_mode<synchronous>, transform_indices = @transform_3, window_bounds = array<i64: 32, 32>}, {pipeline_mode = #tpu.pipeline_mode<synchronous>, transform_indices = @transform_4, window_bounds = array<i64: 1, 32>}, {transform_indices = @transform_5, window_bounds = array<i64: 1, 8, 32>}]} {
    %c0 = arith.constant 0 : index
    %c0_0 = arith.constant 0 : index
    %c0_1 = arith.constant 0 : index
    %0 = vector.load %arg1[%c0, %c0_0, %c0_1] : memref<1x8x32xf32, #tpu.memory_space<vmem>>, vector<1x8x32xf32>
    %1 = vector.shape_cast %0 : vector<1x8x32xf32> to vector<8x32xf32>
    %2 = arith.truncf %1 : vector<8x32xf32> to vector<8x32xbf16>
    %c0_2 = arith.constant 0 : index
    %c0_3 = arith.constant 0 : index
    %3 = vector.load %arg2[%c0_2, %c0_3] : memref<32x96xbf16, #tpu.memory_space<vmem>>, vector<32x96xbf16>
    %cst = arith.constant dense<0.000000e+00> : vector<8x96xf32>
    %4 = tpu.matmul %2, %3, %cst {dimension_numbers = #tpu.dot_dimension_numbers<[1], [0], [0], [1], [0, 0, 1, 1], [], []>} : vector<8x32xbf16>, vector<32x96xbf16>, vector<8x96xf32> -> vector<8x96xf32>
    %c0_4 = arith.constant 0 : index
    %c0_5 = arith.constant 0 : index
    %5 = vector.load %arg3[%c0_4, %c0_5] : memref<1x96xf32, #tpu.memory_space<vmem>>, vector<1x96xf32>
    %6 = vector.broadcast %5 : vector<1x96xf32> to vector<8x96xf32>
    %7 = arith.addf %4, %6 : vector<8x96xf32>
    %8 = vector.extract_strided_slice %7 {offsets = [0, 0], sizes = [8, 32], strides = [1, 1]} : vector<8x96xf32> to vector<8x32xf32>
    %9 = vector.extract_strided_slice %7 {offsets = [0, 32], sizes = [8, 32], strides = [1, 1]} : vector<8x96xf32> to vector<8x32xf32>
    %10 = vector.extract_strided_slice %7 {offsets = [0, 64], sizes = [8, 32], strides = [1, 1]} : vector<8x96xf32> to vector<8x32xf32>
    %11 = tpu.iota {dimensions = array<i32: 0>} : vector<8x8xi32>
    %12 = tpu.iota {dimensions = array<i32: 1>} : vector<8x8xi32>
    %13 = arith.cmpi sge, %11, %12 : vector<8x8xi32>
    %c5_i32 = arith.constant 5 : i32
    %c0_i32 = arith.constant 0 : i32
    %14 = arith.cmpi eq, %c5_i32, %c0_i32 : i32
    %c1_i32 = arith.constant 1 : i32
    %15 = arith.select %14, %c1_i32, %c5_i32 : i32
    %16 = vector.broadcast %15 : i32 to vector<8x8xi32>
    %17 = arith.remsi %12, %16 : vector<8x8xi32>
    %c0_i32_6 = arith.constant 0 : i32
    %18 = vector.broadcast %c0_i32_6 : i32 to vector<8x8xi32>
    %19 = arith.cmpi ne, %17, %18 : vector<8x8xi32>
    %c0_i32_7 = arith.constant 0 : i32
    %20 = vector.broadcast %c0_i32_7 : i32 to vector<8x8xi32>
    %21 = arith.cmpi slt, %17, %20 : vector<8x8xi32>
    %c0_i32_8 = arith.constant 0 : i32
    %22 = arith.cmpi slt, %15, %c0_i32_8 : i32
    %23 = vector.broadcast %22 : i1 to vector<8x8xi1>
    %24 = vector.broadcast %23 : vector<8x8xi1> to vector<8x8xi1>
    %25 = arith.xori %21, %24 : vector<8x8xi1>
    %26 = arith.andi %25, %19 : vector<8x8xi1>
    %27 = vector.broadcast %15 : i32 to vector<8x8xi32>
    %28 = arith.addi %17, %27 : vector<8x8xi32>
    %29 = arith.select %26, %28, %17 : vector<8x8xi1>, vector<8x8xi32>
    %c4_i32 = arith.constant 4 : i32
    %30 = vector.broadcast %c4_i32 : i32 to vector<8x8xi32>
    %31 = arith.cmpi ne, %29, %30 : vector<8x8xi32>
    %32 = arith.andi %13, %31 : vector<8x8xi1>
    %33 = vector.extract_strided_slice %8 {offsets = [0, 0], sizes = [8, 8], strides = [1, 1]} : vector<8x32xf32> to vector<8x8xf32>
    %34 = arith.truncf %33 : vector<8x8xf32> to vector<8x8xbf16>
    %35 = vector.extract_strided_slice %9 {offsets = [0, 0], sizes = [8, 8], strides = [1, 1]} : vector<8x32xf32> to vector<8x8xf32>
    %36 = arith.truncf %35 : vector<8x8xf32> to vector<8x8xbf16>
    %37 = vector.extract_strided_slice %10 {offsets = [0, 0], sizes = [8, 8], strides = [1, 1]} : vector<8x32xf32> to vector<8x8xf32>
    %38 = arith.truncf %37 : vector<8x8xf32> to vector<8x8xbf16>
    %cst_9 = arith.constant dense<0.000000e+00> : vector<8x8xf32>
    %39 = tpu.matmul %34, %36, %cst_9 {dimension_numbers = #tpu.dot_dimension_numbers<[1], [1], [0], [0], [0, 0, 1, 0], [], []>} : vector<8x8xbf16>, vector<8x8xbf16>, vector<8x8xf32> -> vector<8x8xf32>
    %cst_10 = arith.constant 0.353553385 : f32
    %40 = vector.broadcast %cst_10 : f32 to vector<8x8xf32>
    %41 = arith.mulf %39, %40 : vector<8x8xf32>
    %cst_11 = arith.constant -1.000000e+30 : f32
    %42 = vector.broadcast %cst_11 : f32 to vector<8x8xf32>
    %43 = arith.select %32, %41, %42 : vector<8x8xi1>, vector<8x8xf32>
    %cst_12 = arith.constant dense<0xFF800000> : vector<8xf32>
    %44 = vector.multi_reduction <maximumf>, %43, %cst_12 [1] : vector<8x8xf32> to vector<8xf32>
    %45 = vector.shape_cast %44 : vector<8xf32> to vector<8x1xf32>
    %46 = vector.broadcast %45 : vector<8x1xf32> to vector<8x8xf32>
    %47 = arith.subf %43, %46 : vector<8x8xf32>
    %48 = math.exp %47 : vector<8x8xf32>
    %cst_13 = arith.constant dense<0.000000e+00> : vector<8xf32>
    %49 = vector.multi_reduction <add>, %48, %cst_13 [1] : vector<8x8xf32> to vector<8xf32>
    %50 = vector.shape_cast %49 : vector<8xf32> to vector<8x1xf32>
    %51 = tpu.reciprocal %50 {approx = true} : vector<8x1xf32> -> vector<8x1xf32>
    %52 = vector.broadcast %51 : vector<8x1xf32> to vector<8x8xf32>
    %53 = arith.mulf %48, %52 : vector<8x8xf32>
    %54 = arith.truncf %53 : vector<8x8xf32> to vector<8x8xbf16>
    %cst_14 = arith.constant dense<0.000000e+00> : vector<8x8xf32>
    %55 = tpu.matmul %54, %38, %cst_14 {dimension_numbers = #tpu.dot_dimension_numbers<[1], [0], [0], [1], [0, 0, 1, 1], [], []>} : vector<8x8xbf16>, vector<8x8xbf16>, vector<8x8xf32> -> vector<8x8xf32>
    %56 = vector.extract_strided_slice %8 {offsets = [0, 8], sizes = [8, 8], strides = [1, 1]} : vector<8x32xf32> to vector<8x8xf32>
    %57 = arith.truncf %56 : vector<8x8xf32> to vector<8x8xbf16>
    %58 = vector.extract_strided_slice %9 {offsets = [0, 8], sizes = [8, 8], strides = [1, 1]} : vector<8x32xf32> to vector<8x8xf32>
    %59 = arith.truncf %58 : vector<8x8xf32> to vector<8x8xbf16>
    %60 = vector.extract_strided_slice %10 {offsets = [0, 8], sizes = [8, 8], strides = [1, 1]} : vector<8x32xf32> to vector<8x8xf32>
    %61 = arith.truncf %60 : vector<8x8xf32> to vector<8x8xbf16>
    %cst_15 = arith.constant dense<0.000000e+00> : vector<8x8xf32>
    %62 = tpu.matmul %57, %59, %cst_15 {dimension_numbers = #tpu.dot_dimension_numbers<[1], [1], [0], [0], [0, 0, 1, 0], [], []>} : vector<8x8xbf16>, vector<8x8xbf16>, vector<8x8xf32> -> vector<8x8xf32>
    %cst_16 = arith.constant 0.353553385 : f32
    %63 = vector.broadcast %cst_16 : f32 to vector<8x8xf32>
    %64 = arith.mulf %62, %63 : vector<8x8xf32>
    %cst_17 = arith.constant -1.000000e+30 : f32
    %65 = vector.broadcast %cst_17 : f32 to vector<8x8xf32>
    %66 = arith.select %32, %64, %65 : vector<8x8xi1>, vector<8x8xf32>
    %cst_18 = arith.constant dense<0xFF800000> : vector<8xf32>
    %67 = vector.multi_reduction <maximumf>, %66, %cst_18 [1] : vector<8x8xf32> to vector<8xf32>
    %68 = vector.shape_cast %67 : vector<8xf32> to vector<8x1xf32>
    %69 = vector.broadcast %68 : vector<8x1xf32> to vector<8x8xf32>
    %70 = arith.subf %66, %69 : vector<8x8xf32>
    %71 = math.exp %70 : vector<8x8xf32>
    %cst_19 = arith.constant dense<0.000000e+00> : vector<8xf32>
    %72 = vector.multi_reduction <add>, %71, %cst_19 [1] : vector<8x8xf32> to vector<8xf32>
    %73 = vector.shape_cast %72 : vector<8xf32> to vector<8x1xf32>
    %74 = tpu.reciprocal %73 {approx = true} : vector<8x1xf32> -> vector<8x1xf32>
    %75 = vector.broadcast %74 : vector<8x1xf32> to vector<8x8xf32>
    %76 = arith.mulf %71, %75 : vector<8x8xf32>
    %77 = arith.truncf %76 : vector<8x8xf32> to vector<8x8xbf16>
    %cst_20 = arith.constant dense<0.000000e+00> : vector<8x8xf32>
    %78 = tpu.matmul %77, %61, %cst_20 {dimension_numbers = #tpu.dot_dimension_numbers<[1], [0], [0], [1], [0, 0, 1, 1], [], []>} : vector<8x8xbf16>, vector<8x8xbf16>, vector<8x8xf32> -> vector<8x8xf32>
    %79 = vector.extract_strided_slice %8 {offsets = [0, 16], sizes = [8, 8], strides = [1, 1]} : vector<8x32xf32> to vector<8x8xf32>
    %80 = arith.truncf %79 : vector<8x8xf32> to vector<8x8xbf16>
    %81 = vector.extract_strided_slice %9 {offsets = [0, 16], sizes = [8, 8], strides = [1, 1]} : vector<8x32xf32> to vector<8x8xf32>
    %82 = arith.truncf %81 : vector<8x8xf32> to vector<8x8xbf16>
    %83 = vector.extract_strided_slice %10 {offsets = [0, 16], sizes = [8, 8], strides = [1, 1]} : vector<8x32xf32> to vector<8x8xf32>
    %84 = arith.truncf %83 : vector<8x8xf32> to vector<8x8xbf16>
    %cst_21 = arith.constant dense<0.000000e+00> : vector<8x8xf32>
    %85 = tpu.matmul %80, %82, %cst_21 {dimension_numbers = #tpu.dot_dimension_numbers<[1], [1], [0], [0], [0, 0, 1, 0], [], []>} : vector<8x8xbf16>, vector<8x8xbf16>, vector<8x8xf32> -> vector<8x8xf32>
    %cst_22 = arith.constant 0.353553385 : f32
    %86 = vector.broadcast %cst_22 : f32 to vector<8x8xf32>
    %87 = arith.mulf %85, %86 : vector<8x8xf32>
    %cst_23 = arith.constant -1.000000e+30 : f32
    %88 = vector.broadcast %cst_23 : f32 to vector<8x8xf32>
    %89 = arith.select %32, %87, %88 : vector<8x8xi1>, vector<8x8xf32>
    %cst_24 = arith.constant dense<0xFF800000> : vector<8xf32>
    %90 = vector.multi_reduction <maximumf>, %89, %cst_24 [1] : vector<8x8xf32> to vector<8xf32>
    %91 = vector.shape_cast %90 : vector<8xf32> to vector<8x1xf32>
    %92 = vector.broadcast %91 : vector<8x1xf32> to vector<8x8xf32>
    %93 = arith.subf %89, %92 : vector<8x8xf32>
    %94 = math.exp %93 : vector<8x8xf32>
    %cst_25 = arith.constant dense<0.000000e+00> : vector<8xf32>
    %95 = vector.multi_reduction <add>, %94, %cst_25 [1] : vector<8x8xf32> to vector<8xf32>
    %96 = vector.shape_cast %95 : vector<8xf32> to vector<8x1xf32>
    %97 = tpu.reciprocal %96 {approx = true} : vector<8x1xf32> -> vector<8x1xf32>
    %98 = vector.broadcast %97 : vector<8x1xf32> to vector<8x8xf32>
    %99 = arith.mulf %94, %98 : vector<8x8xf32>
    %100 = arith.truncf %99 : vector<8x8xf32> to vector<8x8xbf16>
    %cst_26 = arith.constant dense<0.000000e+00> : vector<8x8xf32>
    %101 = tpu.matmul %100, %84, %cst_26 {dimension_numbers = #tpu.dot_dimension_numbers<[1], [0], [0], [1], [0, 0, 1, 1], [], []>} : vector<8x8xbf16>, vector<8x8xbf16>, vector<8x8xf32> -> vector<8x8xf32>
    %102 = vector.extract_strided_slice %8 {offsets = [0, 24], sizes = [8, 8], strides = [1, 1]} : vector<8x32xf32> to vector<8x8xf32>
    %103 = arith.truncf %102 : vector<8x8xf32> to vector<8x8xbf16>
    %104 = vector.extract_strided_slice %9 {offsets = [0, 24], sizes = [8, 8], strides = [1, 1]} : vector<8x32xf32> to vector<8x8xf32>
    %105 = arith.truncf %104 : vector<8x8xf32> to vector<8x8xbf16>
    %106 = vector.extract_strided_slice %10 {offsets = [0, 24], sizes = [8, 8], strides = [1, 1]} : vector<8x32xf32> to vector<8x8xf32>
    %107 = arith.truncf %106 : vector<8x8xf32> to vector<8x8xbf16>
    %cst_27 = arith.constant dense<0.000000e+00> : vector<8x8xf32>
    %108 = tpu.matmul %103, %105, %cst_27 {dimension_numbers = #tpu.dot_dimension_numbers<[1], [1], [0], [0], [0, 0, 1, 0], [], []>} : vector<8x8xbf16>, vector<8x8xbf16>, vector<8x8xf32> -> vector<8x8xf32>
    %cst_28 = arith.constant 0.353553385 : f32
    %109 = vector.broadcast %cst_28 : f32 to vector<8x8xf32>
    %110 = arith.mulf %108, %109 : vector<8x8xf32>
    %cst_29 = arith.constant -1.000000e+30 : f32
    %111 = vector.broadcast %cst_29 : f32 to vector<8x8xf32>
    %112 = arith.select %32, %110, %111 : vector<8x8xi1>, vector<8x8xf32>
    %cst_30 = arith.constant dense<0xFF800000> : vector<8xf32>
    %113 = vector.multi_reduction <maximumf>, %112, %cst_30 [1] : vector<8x8xf32> to vector<8xf32>
    %114 = vector.shape_cast %113 : vector<8xf32> to vector<8x1xf32>
    %115 = vector.broadcast %114 : vector<8x1xf32> to vector<8x8xf32>
    %116 = arith.subf %112, %115 : vector<8x8xf32>
    %117 = math.exp %116 : vector<8x8xf32>
    %cst_31 = arith.constant dense<0.000000e+00> : vector<8xf32>
    %118 = vector.multi_reduction <add>, %117, %cst_31 [1] : vector<8x8xf32> to vector<8xf32>
    %119 = vector.shape_cast %118 : vector<8xf32> to vector<8x1xf32>
    %120 = tpu.reciprocal %119 {approx = true} : vector<8x1xf32> -> vector<8x1xf32>
    %121 = vector.broadcast %120 : vector<8x1xf32> to vector<8x8xf32>
    %122 = arith.mulf %117, %121 : vector<8x8xf32>
    %123 = arith.truncf %122 : vector<8x8xf32> to vector<8x8xbf16>
    %cst_32 = arith.constant dense<0.000000e+00> : vector<8x8xf32>
    %124 = tpu.matmul %123, %107, %cst_32 {dimension_numbers = #tpu.dot_dimension_numbers<[1], [0], [0], [1], [0, 0, 1, 1], [], []>} : vector<8x8xbf16>, vector<8x8xbf16>, vector<8x8xf32> -> vector<8x8xf32>
    %125 = tpu.concatenate %55, %78, %101, %124 in 1 : vector<8x8xf32>, vector<8x8xf32>, vector<8x8xf32>, vector<8x8xf32> -> vector<8x32xf32>
    %126 = arith.truncf %125 : vector<8x32xf32> to vector<8x32xbf16>
    %c0_33 = arith.constant 0 : index
    %c0_34 = arith.constant 0 : index
    %127 = vector.load %arg4[%c0_33, %c0_34] : memref<32x32xbf16, #tpu.memory_space<vmem>>, vector<32x32xbf16>
    %cst_35 = arith.constant dense<0.000000e+00> : vector<8x32xf32>
    %128 = tpu.matmul %126, %127, %cst_35 {dimension_numbers = #tpu.dot_dimension_numbers<[1], [0], [0], [1], [0, 0, 1, 1], [], []>} : vector<8x32xbf16>, vector<32x32xbf16>, vector<8x32xf32> -> vector<8x32xf32>
    %c0_36 = arith.constant 0 : index
    %c0_37 = arith.constant 0 : index
    %129 = vector.load %arg5[%c0_36, %c0_37] : memref<1x32xf32, #tpu.memory_space<vmem>>, vector<1x32xf32>
    %130 = vector.broadcast %129 : vector<1x32xf32> to vector<8x32xf32>
    %131 = arith.addf %128, %130 : vector<8x32xf32>
    %c0_38 = arith.constant 0 : index
    %c0_39 = arith.constant 0 : index
    %c0_40 = arith.constant 0 : index
    %132 = vector.load %arg6[%c0_38, %c0_39, %c0_40] : memref<1x8x32xf32, #tpu.memory_space<vmem>>, vector<1x8x32xf32>
    %133 = vector.shape_cast %132 : vector<1x8x32xf32> to vector<8x32xf32>
    %134 = vector.shape_cast %131 : vector<8x32xf32> to vector<1x8x32xf32>
    tpu.vector_store %arg6[%c0_38, %c0_39, %c0_40], %134 {strides = array<i32>} : memref<1x8x32xf32, #tpu.memory_space<vmem>>, vector<1x8x32xf32>,
    return
  }
  func.func @transform_0(%arg0: i32) -> (i32, i32, i32) {
    %c0_i32 = arith.constant 0 : i32
    %c0_i32_0 = arith.constant 0 : i32
    %c0_i32_1 = arith.constant 0 : i32
    return %arg0, %c0_i32, %c0_i32_0 : i32, i32, i32
  }
  func.func @transform_1(%arg0: i32) -> (i32, i32) {
    %c0_i32 = arith.constant 0 : i32
    %c0_i32_0 = arith.constant 0 : i32
    %c0_i32_1 = arith.constant 0 : i32
    return %c0_i32, %c0_i32_0 : i32, i32
  }
  func.func @transform_2(%arg0: i32) -> (i32, i32) {
    %c0_i32 = arith.constant 0 : i32
    %c0_i32_0 = arith.constant 0 : i32
    %c0_i32_1 = arith.constant 0 : i32
    return %c0_i32, %c0_i32_0 : i32, i32
  }
  func.func @transform_3(%arg0: i32) -> (i32, i32) {
    %c0_i32 = arith.constant 0 : i32
    %c0_i32_0 = arith.constant 0 : i32
    %c0_i32_1 = arith.constant 0 : i32
    return %c0_i32, %c0_i32_0 : i32, i32
  }
  func.func @transform_4(%arg0: i32) -> (i32, i32) {
    %c0_i32 = arith.constant 0 : i32
    %c0_i32_0 = arith.constant 0 : i32
    %c0_i32_1 = arith.constant 0 : i32
    return %c0_i32, %c0_i32_0 : i32, i32
  }
  func.func @transform_5(%arg0: i32) -> (i32, i32, i32) {
    %c0_i32 = arith.constant 0 : i32
    %c0_i32_0 = arith.constant 0 : i32
    %c0_i32_1 = arith.constant 0 : i32
    return %arg0, %c0_i32, %c0_i32_0 : i32, i32, i32
  }
}

</mosaic_0001>

<bundles_post_ra>
// kernel: tpu_custom_call.1
= control target key start
LH: loop header
LB: loop body
LE: loop exit
PB: predicated region body
PF: predicated region fallthrough
CT: control target
= control target key end

     0   :  { %10 = vsyncpa [#allocation3], 0  ;;  %s1704_s0 = inlined_call_operand.hbm [shape: f32[2,8,32], index: 0, kind: input, shape index: {}]   ;;  %s1705_s1 = inlined_call_operand.hbm [shape: bf16[32,96], index: 1, kind: input, shape index: {}]   ;;  %s1706_s2 = inlined_call_operand.vmem [shape: f32[1,96], index: 2, kind: input, shape index: {}]   ;;  %s1707_s3 = inlined_call_operand.hbm [shape: bf16[32,32], index: 3, kind: input, shape index: {}]   ;;  %s1708_s4 = inlined_call_operand.vmem [shape: f32[1,32], index: 4, kind: input, shape index: {}]   ;;  %s1709_s5 = inlined_call_operand.hbm [shape: f32[2,8,32], index: 5, kind: output, shape index: {}]  }
   0x1   :  { %12 = vsyncpa [#allocation3 + $0x1], 0 }
   0x2   :  { %13 = vsyncpa [#allocation6], 0 }
   0x3   :  { %14 = vsyncpa [#allocation4], 0 }
   0x4   :  { %16 = vsyncpa [#allocation4 + $0x1], 0  ;;  %s1427_s18 = smov 0   ;;  %s1429_s19 = smov 0  }
   0x5   :  { %s1431_s20 = smov 0   ;;  %s1433_s21 = smov 0  }
   0x6 LB: > { %s1448_s22 = sadd.s32 4294967295, %s1373_s21   ;;  %s1000_s23 = sadd.s32 4294967294, %s1373_s21   ;;  %s1373_s21 = sphi %s1433_s21, %s1733_s21   ;;  %s1369_s20 = sphi %s1431_s20, %s1732_s20   ;;  %s1365_s19 = sphi %s1429_s19, %s1731_s19   ;;  %s1361_s18 = sphi %s1427_s18, %s1730_s18  }
   0x7   : > { %p42_p0 = scmp.ne.s32.totalorder %s1365_s19, %s1361_s18  ;;  %p1710_p1 = scmp.eq.s32.totalorder %s1448_s22, 0 }
   0x8   : > { %p156_p3 = scmp.eq.s32.totalorder %s1000_s23, 1  ;;  %p1001_p5 = scmp.ge.s32.totalorder %s1373_s21, 1 }
   0x9   : > { %p1457_p4 = por %p1710_p1, %p42_p0  ;;  %p163_p7 = scmp.lt.s32.totalorder %s1373_s21, 3 }
   0xa   : > { %p1462_p6 = por %p156_p3, %p42_p0  ;;  %s1375_s27 = smov [#allocation5]  }
   0xb   : > { %s1714_s24 = scalar_select %p1457_p4, 1, 0 }
   0xc   : > { %s1715_s25 = scalar_select %p1462_p6, 1, 0 }
   0xd   : > { %p1467_p8 = pnand %p1001_p5, %p163_p7  ;;  %s175_s28 = sshll.u32 %s1375_s27, 4  ;;  %s176_s28 = int_to_ptr.vmem [resolvable:$true] %s175_s28 }
   0xe   : > { %s1376_s30 = smov [#allocation7]   ;;  %s1236_s7 = scalar_lea.vmem %s176_s28, 256 }
   0xf   : > { %s1716_s26 = scalar_select %p1467_p8, 1, 0 }
  0x10   : > { %p1132_p9 = pneg %p1467_p8  ;;  %s191_s6 = sshll.u32 %s1376_s30, 4  ;;  %s192_s6 = int_to_ptr.vmem [resolvable:$true] %s191_s6 }
  0x11   : > { %p1237_p13 = scmp.ne.s32.totalorder %s176_s28, %s1236_s7  ;;  %p1244_p5 = scmp.lt.s32.totalorder %s176_s28, %s176_s28 }
  0x12   : > { %p1476_p11 = pnand %p1132_p9, %p1710_p1  ;;  %p1245_p7 = scmp.lt.s32.totalorder %s1236_s7, %s1236_s7 }
  0x14   : > { %p1227_p12 = pneg %p1476_p11  ;;  %p1246_p10 = por %p1245_p7, %p1244_p5 }
  0x16   : > { %p1239_p0 = pnand %p1237_p13, %p1227_p12 }
  0x18   : > { %p1240_p3 = pneg %p1239_p0 }
  0x1a   : > { %p1247_p9 = pnand %p1246_p10, %p1240_p3 }
  0x1c   : > { %1250 = shalt.err (!%p1247_p9)
}
  0x1d   : > { %s1377_s8 = smov 64   ;;  %s1378_s9 = smov 4  }
  0x1e   : > { %1135 = dma.hbm_to_vmem [thread:$0]  (!%p1476_p11), %s1705_s1, 256, %s176_s28, [#allocation6], %s1377_s8, %s1377_s8, %s1378_s9  }
  0x1f   : > { %s1262_s12 = scalar_lea.vmem %s192_s6, 256  ;;  %p1270_p2 = scmp.lt.s32.totalorder %s192_s6, %s192_s6 }
  0x20   : > { %p1263_p1 = scmp.ne.s32.totalorder %s192_s6, %s1262_s12  ;;  %p1271_p6 = scmp.lt.s32.totalorder %s1262_s12, %s1262_s12 }
  0x22   : > { %p1265_p13 = pnand %p1263_p1, %p1227_p12  ;;  %p1272_p5 = por %p1271_p6, %p1270_p2 }
  0x24   : > { %p1266_p0 = pneg %p1265_p13 }
  0x26   : > { %p1273_p10 = pnand %p1272_p5, %p1266_p0 }
  0x28   : > { %1276 = shalt.err (!%p1273_p10)
}
  0x29   : > { %1138 = dma.hbm_to_vmem [thread:$0]  (!%p1476_p11), %s1707_s3, 256, %s192_s6, [#allocation6], %s1377_s8, %s1377_s8, %s1378_s9  }
  0x2a   : > { %s1499_s15 = sadd.s32 1, %s1373_s21   ;;  %s29_s16 = sadd.s32 1, %s1369_s20 }
  0x2b   : > { %s26_s17 = ssub.s32 %s1373_s21, %s1499_s15  ;;  %p36_p1 = scmp.ne.s32.totalorder %s1369_s20, %s1365_s19 }
  0x2c   : > { %p27_p2 = scmp.eq.s32.totalorder %s26_s17, 0  ;;  %p37_p6 = scmp.eq.s32.totalorder %s1373_s21, 0 }
  0x2d   : > { %p1718_p12 = scmp.eq.s32.totalorder %s1448_s22, 1  ;;  %p1149_p7 = scmp.lt.s32.totalorder %s1373_s21, 2 }
  0x2e   : > { %s1515_s27 = scalar_select %p27_p2, %s1369_s20, %s29_s16  }
  0x2f   : > { %p1509_p3 = por %p1718_p12, %p36_p1  ;;  %p38_p9 = por %p37_p6, %p36_p1 }
  0x30   : > { %s208_s28 = sand.u32 1, %s1369_s20   ;;  %s1006_s30 = sshll.u32 %s1373_s21, 7 }
  0x31   : > { %s1719_s23 = scalar_select %p1509_p3, 1, 0 }
  0x32   : > { %s1005_s29 = sshll.u32 %s208_s28, 3  ;;  %s1522_s8 = scalar_lea.hbm %s1704_s0, %s1006_s30 }
  0x33   : > { %s212_s9 = scalar_lea.vmem [#allocation2], %s1005_s29  ;;  %p1524_p11 = pnand %p1149_p7, %p38_p9 }
  0x34   : > { %s219_s10 = sshll.u32 %s212_s9, 4  ;;  %s209_s12 = scalar_lea.sflag [#allocation3], %s208_s28  ;;  %s220_s10 = int_to_ptr.vmem [resolvable:$true] %s219_s10 }
  0x35   : > { %s1277_s13 = scalar_lea.hbm %s1522_s8, 128  ;;  %p1279_p0 = pneg %p1524_p11 }
  0x36   : > { %p1278_p13 = scmp.ne.s32.totalorder %s1522_s8, %s1277_s13  ;;  %s1282_s17 = scalar_lea.hbm %s1704_s0, 256 }
  0x37   : > { %p1283_p1 = scmp.lt.s32.totalorder %s1522_s8, %s1704_s0  ;;  %p1284_p2 = scmp.lt.s32.totalorder %s1282_s17, %s1277_s13 }
  0x38   : > { %p1280_p5 = pnand %p1279_p0, %p1278_p13 }
  0x39   : > { %p1285_p6 = por %p1284_p2, %p1283_p1 }
  0x3a   : > { %p1281_p10 = pneg %p1280_p5 }
  0x3c   : > { %p1286_p12 = pnand %p1285_p6, %p1281_p10 }
  0x3e   : > { %1289 = shalt.err (!%p1286_p12)
}
  0x3f   : > { %s1290_s6 = scalar_lea.vmem %s220_s10, 128  ;;  %s1379_s28 = smov [#allocation2]  }
  0x40   : > { %p1291_p7 = scmp.ne.s32.totalorder %s220_s10, %s1290_s6  ;;  %s1295_s7 = sshll.u32 %s1379_s28, 4  ;;  %s1296_s7 = int_to_ptr.vmem [resolvable:$false] %s1295_s7 }
  0x41   : > { %s1297_s9 = scalar_lea.vmem %s1296_s7, 256  ;;  %p1298_p13 = scmp.lt.s32.totalorder %s220_s10, %s1296_s7 }
  0x42   : > { %p1293_p9 = pnand %p1291_p7, %p1279_p0  ;;  %p1299_p5 = scmp.lt.s32.totalorder %s1297_s9, %s1290_s6 }
  0x44   : > { %p1294_p3 = pneg %p1293_p9  ;;  %p1300_p4 = por %p1299_p5, %p1298_p13 }
  0x46   : > { %p1301_p8 = pnand %p1300_p4, %p1294_p3 }
  0x48   : > { %1304 = shalt.err (!%p1301_p8)
}
  0x49   : > { %1142 = dma.hbm_to_vmem [thread:$0]  (!%p1524_p11), %s1522_s8, 128, %s220_s10, %s209_s12  }
  0x4a   : > { %p1721_p10 = scmp.ne.s32.totalorder %s1716_s26, 0 }
  0x4b   : > { %s1545_s13 = sand.u32 (!%p1721_p10), 1, %s1365_s19   ;;  %p1722_p4 = scmp.ne.s32.totalorder (!%p1721_p10), %s1714_s24, 0 }
  0x4c   : > { %228 = sbr.rel (%p1721_p10) target bundleno = 1506 (0x5e2), region = 40  ;;  %s1008_s14 = sshll.u32 (!%p1721_p10), %s1545_s13, 3 }
  0x4d   : > { %s231_s16 = scalar_lea.sflag (!%p1721_p10), [#allocation3], %s1545_s13  ;;  %s234_s17 = scalar_lea.vmem (!%p1721_p10), [#allocation2], %s1008_s14 }
  0x51   : > { %1348 = dma.done.wait (%p1722_p4), %s231_s16, 128  }
  0x52   : > { %1350 = vsyncadd (%p1722_p4), %s231_s16, 4294967168  ;;  %p1723_p8 = scmp.eq.s32.totalorder %s1448_s22, 0 }
  0x54   : > { %1352 = dma.done.wait (%p1723_p8), [#allocation6], 512   ;;  %p1724_p3 = pmov %p1723_p8 }
  0x55   : > { %v1380_v0 = vmov 0.0   ;;  %vm1381_vm0 = vmmov 0   ;;  %v1205_v1 = vld [vmem:[#allocation5 + $0x8] sm:$0xff]   ;;  %v1206_v2 = vld [vmem:[#allocation5] sm:$0xff]   ;;  %v270_v3 = vld [vmem:[%s234_s17] sm:$0xff]  ;;  %vm295_vm1 = vcmask 261120   ;;  %v339_v23 = vlaneseq }
  0x56   : > { %1354 = vsyncadd (%p1724_p3), [#allocation6], 4294966784  ;;  %1054 = vmatprep.subr.bf16.mxu0 %v1380_v0  ;;  %1058 = vmatprep.mubr.msk.bf16.mxu0 %vm1381_vm0, %v1380_v0  ;;  %v271_v4 = vpack.c.bf16 %v270_v3, %v270_v3  ;;  %v1012_v5 = vld [vmem:[%s1706_s2] ss:$0 sm:$0xff]  ;;  %s1382_s8 = smov 120   ;;  %s1383_s10 = smov 96  }
  0x57   : > { %1062 = vmatprep.subr.bf16.mxu1 %v1380_v0  ;;  %1064 = vmatprep.mubr.msk.bf16.mxu1 %vm1381_vm0, %v1380_v0  ;;  %s1384_s11 = smov 80   ;;  %s1385_s12 = smov 88   ;;  %vm366_vm2 = vcmask 64512   ;;  %v342_v24 = vand.u32 127, %v339_v23  ;;  %v340_v31 = vshrl.u32 %v339_v23, 7  ;;  %vm432_vm9 = vcmask 1043456  }
  0x58   : > { %1055 = vmatpush3.bf16.msra.mxu0 %v1205_v1  ;;  %s1386_s30 = smov 72   ;;  %s1387_s29 = smov 112   ;;  %vm825_vm10 = vcmask 130048   ;;  %vm827_vm11 = vcmask 195584  }
  0x59   : > { %1056 = vmatprep.subr.bf16.mxu0 %v1380_v0  ;;  %s1388_s6 = smov 104   ;;  %v1603_v25 = vmul.u32.u64.low 3435973837, %v342_v24  ;;  %v1604_v26 = vmul.u32.u64.high 3435973837, %v342_v24, %v1603_v25  ;;  %vm343_vm6 = vcmp.ge.s32.totalorder %v340_v31, %v342_v24  ;;  %s1389_s28 = smov 56  }
  0x5a   : > { %s1390_s7 = smov 64   ;;  %s1391_s9 = smov 40  }
  0x5b   : > { %v350_v27 = vshrl.u32 %v1604_v26, 2  ;;  %s1392_s16 = smov 48   ;;  %s1393_s17 = smov 8  }
  0x5c   : > { %1057 = vmatpush3.bf16.msra.mxu0 %v1206_v2  ;;  %s1394_s24 = smov 16   ;;  %s1395_s26 = smov 24  }
  0x5d   : > { %1068 = vmatprep.subr.bf16.mxu0 %v1380_v0  ;;  %v351_v28 = vmul.u32 5, %v350_v27  ;;  %p1727_p0 = scmp.ne.s32.totalorder %s1719_s23, 0 }
  0x5f   : > { %1059 = vmatmul.mubr.msk.bf16.vlgmr.msra.gmra.mxu0 %vm295_vm1, %v271_v4  ;;  %v352_v29 = vsub.s32 %v342_v24, %v351_v28 }
  0x60   : > { %1070 = vmatprep.mubr.msk.bf16.mxu0 %vm1381_vm0, %v1380_v0 }
  0x61   : > { %vm355_vm3 = vcmp.ne.s32.totalorder %v352_v29, 0  ;;  %vm356_vm4 = vcmp.lt.s32.totalorder %v352_v29, 0  ;;  %v358_v30 = vadd.s32 5, %v352_v29 }
  0x62   : > { %vm357_vm5 = vmand %vm356_vm4, %vm355_vm3 }
  0x63   : > { %v359_v32 = vsel %vm357_vm5, %v358_v30, %v352_v29 }
  0x64   : > { %vm360_vm7 = vcmp.ne.s32.totalorder %v359_v32, 4 }
  0x65   : > { %vm1607_vm8 = vmand %vm343_vm6, %vm360_vm7 }
 0x11f   : > { %v333_v6 = vpop.f32.mrf.mxu0 }
 0x120   : > { %v334_v7 = vadd.f32 %v1012_v5, %v333_v6 }
 0x121   : > { %v1060_v8 = vpop.f32.mrf.mxu0 }
 0x122   : > { %v1573_v9 = vpack.c.bf16 %v334_v7, %v334_v7 }
 0x123   : > { %v336_v10 = vpop.f32.mrf.mxu0 }
 0x124   : > { %476 = vrot.lane.b32.xlu1 %v1573_v9, %s1382_s8  ;;  %364 = vrot.lane.b32.xlu0 %v1573_v9, %s1383_s10 }
 0x125   : > { %v1061_v11 = vpop.f32.mrf.mxu0 }
 0x128   : > { %590 = vrot.lane.b32.xlu1 %v1573_v9, %s1384_s11  ;;  %478 = vrot.lane.b32.xlu0 %v1573_v9, %s1385_s12  ;;  %s1029_s11 = sshll.u32 %s1448_s22, 7  ;;  %s268_s12 = scalar_lea.vmem [#allocation8], %s1008_s14 }
 0x129   : > { %s898_s22 = scalar_lea.sflag [#allocation4], %s1545_s13  ;;  %s1396_s14 = smov [#allocation8]  }
 0x12c   : > { %702 = vrot.lane.b32.xlu1 %v1573_v9, %s1386_s30  ;;  %588 = vrot.lane.b32.xlu0 %v1573_v9, %s1387_s29  ;;  %s911_s30 = sshll.u32 %s268_s12, 4  ;;  %s1662_s30 = int_to_ptr.vmem [resolvable:$true] %s911_s30 }
 0x130   : > { %700 = vrot.lane.b32.xlu0 %v1573_v9, %s1388_s6 }
 0x196   : > { %v365_v12 = vpop.permute.xlu0 %364  ;;  %v477_v15 = vpop.permute.xlu1 %476 }
 0x197   : > { %v371_v13 = vsel %vm366_vm2, %v365_v12, 0 }
 0x198   : > { %1063 = vmatpush3.bf16.xpose.msra.mxu1 %v371_v13 }
 0x199   : > { %1074 = vmatprep.subr.bf16.mxu1 %v1380_v0 }
 0x19a   : > { %v479_v14 = vpop.permute.xlu0 %478  ;;  %v591_v17 = vpop.permute.xlu1 %590 }
 0x19b   : > { %v484_v16 = vsel %vm366_vm2, %v479_v14, 0  ;;  %v596_v18 = vsel %vm366_vm2, %v591_v17, 0 }
 0x19e   : > { %v703_v19 = vpop.permute.xlu1 %702  ;;  %v589_v20 = vpop.permute.xlu0 %588 }
 0x19f   : > { %1065 = vmatmul.mubr.msk.bf16.vlgmr.msra.gmra.mxu1 %vm366_vm2, %v1573_v9  ;;  %v708_v21 = vsel %vm366_vm2, %v703_v19, 0 }
 0x1a0   : > { %1075 = vmatpush3.bf16.xpose.msra.mxu1 %v484_v16  ;;  %1076 = vmatprep.mubr.msk.bf16.mxu1 %vm1381_vm0, %v1380_v0 }
 0x1a1   : > { %1086 = vmatprep.subr.bf16.mxu1 %v1380_v0 }
 0x1a2   : > { %v701_v22 = vpop.permute.xlu0 %700 }
 0x1a7   : > { %1077 = vmatmul.mubr.msk.bf16.vlgmr.msra.gmra.mxu1 %vm366_vm2, %v477_v15 }
 0x1a8   : > { %1087 = vmatpush3.bf16.xpose.msra.mxu1 %v596_v18  ;;  %1088 = vmatprep.mubr.msk.bf16.mxu1 %vm1381_vm0, %v1380_v0 }
 0x1a9   : > { %1098 = vmatprep.subr.bf16.mxu1 %v1380_v0 }
 0x1af   : > { %1089 = vmatmul.mubr.msk.bf16.vlgmr.msra.gmra.mxu1 %vm366_vm2, %v589_v20 }
 0x1b0   : > { %1099 = vmatpush3.bf16.xpose.msra.mxu1 %v708_v21  ;;  %1100 = vmatprep.mubr.msk.bf16.mxu1 %vm1381_vm0, %v1380_v0 }
 0x1b1   : > { %1110 = vmatprep.subr.bf16.mxu1 %v1380_v0 }
 0x1b7   : > { %1101 = vmatmul.mubr.msk.bf16.vlgmr.msra.gmra.mxu1 %vm366_vm2, %v701_v22 }
 0x1b8   : > { %1114 = vmatprep.mubr.msk.bf16.mxu1 %vm1381_vm0, %v1380_v0 }
 0x25f   : > { %v407_v33 = vpop.f32.mrf.mxu1 }
 0x260   : > { %v413_v35 = vmul.f32 0.35355338, %v407_v33 }
 0x261   : > { %v1066_v36 = vpop.f32.mrf.mxu1 }
 0x262   : > { %v414_v37 = vsel %vm1607_vm8, %v413_v35, -1e+30 }
 0x263   : > { %v410_v38 = vpop.f32.mrf.mxu1  ;;  %v415_v39 = vsel %vm366_vm2, %v414_v37, -inf }
 0x264   : > { %416 = vmax.xlane.f32.xlu1 %v415_v39 }
 0x265   : > { %v1067_v40 = vpop.f32.mrf.mxu1 }
 0x267   : > { %v520_v41 = vpop.f32.mrf.mxu1 }
 0x268   : > { %v526_v42 = vmul.f32 0.35355338, %v520_v41 }
 0x269   : > { %v1078_v43 = vpop.f32.mrf.mxu1 }
 0x26a   : > { %v527_v44 = vsel %vm1607_vm8, %v526_v42, -1e+30 }
 0x26b   : > { %v523_v45 = vpop.f32.mrf.mxu1  ;;  %v528_v46 = vsel %vm366_vm2, %v527_v44, -inf }
 0x26c   : > { %529 = vmax.xlane.f32.xlu0 %v528_v46 }
 0x26d   : > { %v1079_v47 = vpop.f32.mrf.mxu1 }
 0x26f   : > { %v632_v48 = vpop.f32.mrf.mxu1 }
 0x270   : > { %v638_v49 = vmul.f32 0.35355338, %v632_v48 }
 0x271   : > { %v1090_v50 = vpop.f32.mrf.mxu1 }
 0x272   : > { %v639_v51 = vsel %vm1607_vm8, %v638_v49, -1e+30 }
 0x273   : > { %v635_v52 = vpop.f32.mrf.mxu1  ;;  %v640_v53 = vsel %vm366_vm2, %v639_v51, -inf }
 0x274   : > { %641 = vmax.xlane.f32.xlu0 %v640_v53  ;;  %v1208_v52 = vld [vmem:[#allocation7] sm:$0xff]  }
 0x275   : > { %v1091_v54 = vpop.f32.mrf.mxu1 }
 0x277   : > { %v744_v55 = vpop.f32.mrf.mxu1 }
 0x278   : > { %v750_v56 = vmul.f32 0.35355338, %v744_v55 }
 0x279   : > { %v1102_v57 = vpop.f32.mrf.mxu1 }
 0x27a   : > { %v751_v58 = vsel %vm1607_vm8, %v750_v56, -1e+30 }
 0x27b   : > { %v747_v59 = vpop.f32.mrf.mxu1  ;;  %v752_v60 = vsel %vm366_vm2, %v751_v58, -inf }
 0x27c   : > { %753 = vmax.xlane.f32.xlu1 %v752_v60 }
 0x27d   : > { %v1103_v61 = vpop.f32.mrf.mxu1 }
 0x2ed   : > { %v417_v62 = vpop.xlane.xlu1 %416 }
 0x2ee   : > { %v418_v63 = vsub.f32 %v414_v37, %v417_v62 }
 0x2f0   : > { %v419_v1 = vmul.f32 1.442695, %v418_v63 }
 0x2f2   : > { %1209 = vpow2.f32 %v419_v1 }
 0x2f5   : > { %v530_v2 = vpop.xlane.xlu0 %529 }
 0x2f6   : > { %v531_v3 = vsub.f32 %v527_v44, %v530_v2 }
 0x2f8   : > { %v532_v4 = vmul.f32 1.442695, %v531_v3 }
 0x2fa   : > { %1211 = vpow2.f32 %v532_v4  ;;  %v1024_v4 = vld [vmem:[%s1708_s4] ss:$0 sm:$0xff] }
 0x2fd   : > { %v642_v5 = vpop.xlane.xlu0 %641 }
 0x2fe   : > { %v643_v6 = vsub.f32 %v639_v51, %v642_v5  ;;  %v1207_v51 = vld [vmem:[#allocation7 + $0x8] sm:$0xff]  }
 0x2ff   : > { %v1210_v7 = vpop.eup %1209  ;;  %1111 = vmatpush3.bf16.msra.mxu1 %v1207_v51 }
 0x300   : > { %v644_v8 = vmul.f32 1.442695, %v643_v6  ;;  %v421_v10 = vsel %vm366_vm2, %v1210_v7, 0.0  ;;  %1112 = vmatprep.subr.bf16.mxu1 %v1380_v0 }
 0x301   : > { %422 = vadd.xlane.f32.xlu0 %v421_v10 }
 0x302   : > { %1213 = vpow2.f32 %v644_v8 }
 0x303   : > { %1113 = vmatpush3.bf16.msra.mxu1 %v1208_v52 }
 0x305   : > { %v754_v15 = vpop.xlane.xlu1 %753 }
 0x306   : > { %v755_v16 = vsub.f32 %v751_v58, %v754_v15 }
 0x307   : > { %v1212_v11 = vpop.eup %1211 }
 0x308   : > { %v534_v12 = vsel %vm366_vm2, %v1212_v11, 0.0  ;;  %v756_v17 = vmul.f32 1.442695, %v755_v16 }
 0x309   : > { %535 = vadd.xlane.f32.xlu1 %v534_v12 }
 0x30a   : > { %1215 = vpow2.f32 %v756_v17 }
 0x30f   : > { %v1214_v13 = vpop.eup %1213 }
 0x310   : > { %v646_v14 = vsel %vm366_vm2, %v1214_v13, 0.0 }
 0x311   : > { %647 = vadd.xlane.f32.xlu0 %v646_v14 }
 0x317   : > { %v1216_v18 = vpop.eup %1215 }
 0x318   : > { %v758_v19 = vsel %vm366_vm2, %v1216_v18, 0.0 }
 0x31a   : > { %540 = vrot.lane.b32.xlu1 %v1573_v9, %s1389_s28  ;;  %s1660_s28 = scalar_lea.hbm %s1709_s5, %s1029_s11 }
 0x327   : > { %427 = vrot.lane.b32.xlu0 %v1573_v9, %s1390_s7  ;;  %s1305_s7 = scalar_lea.vmem %s1662_s30, 128 }
 0x328   : > { %p1306_p11 = scmp.ne.s32.totalorder %s1662_s30, %s1305_s7 }
 0x32a   : > { %p1307_p1 = pnand %p1306_p11, %p1727_p0 }
 0x32b   : > { %764 = vrot.lane.b32.xlu0 %v1573_v9, %s1391_s9  ;;  %s1309_s9 = sshll.u32 %s1396_s14, 4  ;;  %s1310_s9 = int_to_ptr.vmem [resolvable:$false] %s1309_s9 }
 0x32c   : > { %p1308_p2 = pneg %p1307_p1  ;;  %p1312_p6 = scmp.lt.s32.totalorder %s1662_s30, %s1310_s9 }
 0x33e   : > { %759 = vadd.xlane.f32.xlu1 %v758_v19 }
 0x34f   : > { %652 = vrot.lane.b32.xlu1 %v1573_v9, %s1392_s16  ;;  %s1311_s16 = scalar_lea.vmem %s1310_s9, 256 }
 0x350   : > { %p1313_p12 = scmp.lt.s32.totalorder %s1311_s16, %s1305_s7 }
 0x352   : > { %p1314_p7 = por %p1313_p12, %p1312_p6 }
 0x354   : > { %p1315_p9 = pnand %p1314_p7, %p1308_p2 }
 0x38a   : > { %v423_v20 = vpop.xlane.xlu0 %422 }
 0x38b   : > { %1217 = vrcp.f32 %v423_v20 }
 0x392   : > { %v536_v21 = vpop.xlane.xlu1 %535 }
 0x393   : > { %1219 = vrcp.f32 %v536_v21 }
 0x396   : > { %v541_v27 = vpop.permute.xlu1 %540 }
 0x397   : > { %v546_v30 = vsel %vm432_vm9, %v541_v27, 0 }
 0x398   : > { %v1218_v22 = vpop.eup %1217 }
 0x399   : > { %v425_v24 = vmul.f32 %v1218_v22, %v1210_v7 }
 0x39a   : > { %v648_v23 = vpop.xlane.xlu0 %647 }
 0x39b   : > { %v426_v28 = vpack.c.bf16 %v425_v24, %v425_v24  ;;  %1221 = vrcp.f32 %v648_v23 }
 0x39e   : > { %v428_v25 = vpop.permute.xlu0 %427 }
 0x39f   : > { %v434_v26 = vsel %vm432_vm9, %v428_v25, 0 }
 0x3a0   : > { %1069 = vmatpush3.bf16.msra.mxu0 %v434_v26  ;;  %v1220_v29 = vpop.eup %1219 }
 0x3a1   : > { %1080 = vmatprep.subr.bf16.mxu0 %v1380_v0  ;;  %v538_v9 = vmul.f32 %v1220_v29, %v1212_v11 }
 0x3a2   : > { %v765_v37 = vpop.permute.xlu0 %764 }
 0x3a3   : > { %1071 = vmatmul.mubr.msk.bf16.vlgmr.msra.gmra.mxu0 %vm366_vm2, %v426_v28  ;;  %v539_v31 = vpack.c.bf16 %v538_v9, %v538_v9  ;;  %v770_v39 = vsel %vm432_vm9, %v765_v37, 0 }
 0x3a4   : > { %1081 = vmatpush3.bf16.msra.mxu0 %v546_v30  ;;  %1082 = vmatprep.mubr.msk.bf16.mxu0 %vm1381_vm0, %v1380_v0 }
 0x3a5   : > { %1092 = vmatprep.subr.bf16.mxu0 %v1380_v0 }
 0x3a8   : > { %v1222_v32 = vpop.eup %1221 }
 0x3a9   : > { %v650_v34 = vmul.f32 %v1222_v32, %v1214_v13 }
 0x3ab   : > { %1083 = vmatmul.mubr.msk.bf16.vlgmr.msra.gmra.mxu0 %vm366_vm2, %v539_v31  ;;  %v651_v38 = vpack.c.bf16 %v650_v34, %v650_v34 }
 0x3ac   : > { %1094 = vmatprep.mubr.msk.bf16.mxu0 %vm1381_vm0, %v1380_v0 }
 0x3c7   : > { %v760_v33 = vpop.xlane.xlu1 %759 }
 0x3c8   : > { %1223 = vrcp.f32 %v760_v33 }
 0x3cb   : > { %v653_v35 = vpop.permute.xlu1 %652 }
 0x3cc   : > { %v658_v36 = vsel %vm432_vm9, %v653_v35, 0 }
 0x3cd   : > { %1093 = vmatpush3.bf16.msra.mxu0 %v658_v36 }
 0x3ce   : > { %1104 = vmatprep.subr.bf16.mxu0 %v1380_v0 }
 0x3d0   : > { %1095 = vmatmul.mubr.msk.bf16.vlgmr.msra.gmra.mxu0 %vm366_vm2, %v651_v38 }
 0x3d1   : > { %1105 = vmatpush3.bf16.msra.mxu0 %v770_v39  ;;  %1106 = vmatprep.mubr.msk.bf16.mxu0 %vm1381_vm0, %v1380_v0 }
 0x3d5   : > { %v1224_v40 = vpop.eup %1223 }
 0x3d6   : > { %v762_v41 = vmul.f32 %v1224_v40, %v1216_v18 }
 0x3d8   : > { %v763_v42 = vpack.c.bf16 %v762_v41, %v762_v41 }
 0x3da   : > { %1107 = vmatmul.mubr.msk.bf16.vlgmr.msra.gmra.mxu0 %vm366_vm2, %v763_v42 }
 0x463   : > { %v470_v43 = vpop.f32.mrf.mxu0 }
 0x465   : > { %v1072_v44 = vpop.f32.mrf.mxu0 }
 0x467   : > { %v473_v45 = vpop.f32.mrf.mxu0 }
 0x469   : > { %v1073_v46 = vpop.f32.mrf.mxu0 }
 0x46b   : > { %v582_v47 = vpop.f32.mrf.mxu0 }
 0x46c   : > { %813 = vrot.lane.b32.xlu1 %v582_v47, %s1393_s17 }
 0x46d   : > { %v1084_v48 = vpop.f32.mrf.mxu0 }
 0x46f   : > { %v585_v49 = vpop.f32.mrf.mxu0 }
 0x471   : > { %v1085_v50 = vpop.f32.mrf.mxu0 }
 0x490   : > { %v694_v53 = vpop.f32.mrf.mxu0 }
 0x491   : > { %817 = vrot.lane.b32.xlu0 %v694_v53, %s1394_s24 }
 0x492   : > { %v1096_v54 = vpop.f32.mrf.mxu0 }
 0x494   : > { %v697_v55 = vpop.f32.mrf.mxu0 }
 0x496   : > { %v1097_v56 = vpop.f32.mrf.mxu0 }
 0x49a   : > { %v806_v57 = vpop.f32.mrf.mxu0 }
 0x49b   : > { %821 = vrot.lane.b32.xlu1 %v806_v57, %s1395_s26 }
 0x49c   : > { %v1108_v58 = vpop.f32.mrf.mxu0 }
 0x49e   : > { %v809_v59 = vpop.f32.mrf.mxu0 }
 0x4a0   : > { %v1109_v60 = vpop.f32.mrf.mxu0 }
 0x4de   : > { %v814_v61 = vpop.permute.xlu1 %813 }
 0x4df   : > { %v824_v0 = vsel %vm366_vm2, %v470_v43, %v814_v61 }
 0x503   : > { %v818_v62 = vpop.permute.xlu0 %817 }
 0x504   : > { %v826_v63 = vsel %vm825_vm10, %v824_v0, %v818_v62 }
 0x50d   : > { %v822_v1 = vpop.permute.xlu1 %821 }
 0x50e   : > { %v828_v2 = vsel %vm827_vm11, %v826_v63, %v822_v1 }
 0x50f   : > { %v829_v3 = vpack.c.bf16 %v828_v2, %v828_v2 }
 0x511   : > { %1115 = vmatmul.mubr.msk.bf16.vlgmr.msra.gmra.mxu1 %vm295_vm1, %v829_v3 }
 0x5d1   : > { %v890_v5 = vpop.f32.mrf.mxu1 }
 0x5d2   : > { %v891_v6 = vadd.f32 %v1024_v4, %v890_v5 }
 0x5d3   : > { %v1116_v7 = vpop.f32.mrf.mxu1 }
 0x5d4   : > { %896 = vst.msk [vmem:[%s268_s12] sm:$0xff] %vm295_vm1, %v891_v6 }
 0x5d5   : > { %v893_v8 = vpop.f32.mrf.mxu1 }
 0x5d6   : > { %1318 = shalt.err (!%p1315_p9)
}
 0x5d7   : > { %s1319_s17 = scalar_lea.hbm %s1660_s28, 128  ;;  %s1323_s26 = scalar_lea.hbm %s1709_s5, 256 }
 0x5d8   : > { %p1320_p13 = scmp.ne.s32.totalorder %s1660_s28, %s1319_s17  ;;  %p1324_p4 = scmp.lt.s32.totalorder %s1660_s28, %s1709_s5 }
 0x5d9   : > { %p1325_p8 = scmp.lt.s32.totalorder %s1323_s26, %s1319_s17 }
 0x5da   : > { %p1321_p5 = pnand %p1320_p13, %p1727_p0 }
 0x5db   : > { %p1326_p3 = por %p1325_p8, %p1324_p4 }
 0x5dc   : > { %p1322_p10 = pneg %p1321_p5 }
 0x5de   : > { %p1327_p11 = pnand %p1326_p3, %p1322_p10 }
 0x5e0   : > { %1330 = shalt.err (!%p1327_p11)
}
 0x5e1   : > { %1130 = dma.vmem_to_hbm [thread:$0]  (%p1727_p0), %s1662_s30, 128, %s1660_s28, %s898_s22   ;;  %v1117_v10 = vpop.f32.mrf.mxu1 }
 0x5e2 PF: > { %s923_s11 = sand.u32 1, %s1361_s18   ;;  %p1728_p1 = scmp.ne.s32.totalorder %s1715_s25, 0 }
 0x5e3   : > { %p1729_p2 = scmp.ge.s32.totalorder %s1373_s21, 2  ;;  %s924_s12 = scalar_lea.sflag [#allocation4], %s923_s11 }
 0x5e5   : > { %p1144_p6 = pnand %p1729_p2, %p1728_p1 }
 0x5e7   : > { %p1145_p12 = pneg %p1144_p6 }
 0x5e9   : > { %1356 = dma.done.wait (%p1145_p12), %s924_s12, 128  }
 0x5ea   : > { %1358 = vsyncadd (%p1145_p12), %s924_s12, 4294967168  ;;  %p19_p7 = scmp.ge.s32.totalorder %s1499_s15, 4   ;;  %s1730_s18 = smov %s1365_s19 }
 0x5eb   : > { %s1731_s19 = smov %s1369_s20  ;;  %s1732_s20 = smov %s1515_s27 }
 0x5ec   : > { %s1733_s21 = smov %s1499_s15  ;;  %21 = sbr.rel (!%p19_p7) target bundleno = 6 (0x6), region = 93 }
 0x5f1   :  { %929 = vsyncpa [#allocation3], 1 }
 0x5f2   :  { %931 = vsyncpa [#allocation3 + $0x1], 1 }
 0x5f3   :  { %932 = vsyncpa [#allocation6], 1 }
 0x5f4   :  { %933 = vsyncpa [#allocation4], 1 }
 0x5f5   :  { %935 = vsyncpa [#allocation4 + $0x1], 1 }

</bundles_post_ra>
